<compile_context>
chip_gen: v6e
topology: v6e:2x2x1
jax: 0.10.0
libtpu: 0.0.40
codegen_flags: <defaults>
</compile_context>

<pallas_src>
import jax
import jax.numpy as jnp
from jax.experimental import pallas as pl
from jax.experimental.pallas import tpu as pltpu


def _round_up(x: int, m: int) -> int:
    return (x + m - 1) // m * m


def posemap_kernel(z_ref, w_in_ref, b_in_ref, w_hid_ref, b_hid_ref,
                   w_head_ref, b_head_ref, out_ref):
    cdt = w_in_ref.dtype  # compute dtype for MXU operands (f32 or bf16)

    # input layer: Linear(latent_dim, breadth_padded) + ReLU
    h = jnp.dot(z_ref[...], w_in_ref[...], preferred_element_type=jnp.float32)
    h = jnp.maximum(h + b_in_ref[...], 0.0)

    # hidden layers: depth x (Linear(breadth, breadth) + ReLU)
    depth = w_hid_ref.shape[0]
    for d in range(depth):  # static python loop, depth known at trace time
        h = jnp.dot(h.astype(cdt), w_hid_ref[d],
                    preferred_element_type=jnp.float32)
        h = jnp.maximum(h + b_hid_ref[d], 0.0)

    # fused heads: columns 0..2 -> tvec (sigmoid), columns 3..8 -> rvec (linear)
    heads = jnp.dot(h.astype(cdt), w_head_ref[...],
                    preferred_element_type=jnp.float32) + b_head_ref[...]
    col = jax.lax.broadcasted_iota(jnp.int32, heads.shape, dimension=1)
    sig = pl.reciprocal(1.0 + jnp.exp(-heads), approx=False)
    out_ref[...] = jnp.where(col < 3, sig, heads).astype(out_ref.dtype)


def posemap_forward(z, params, *, compute_dtype=jnp.float32, tile_n=None):
    """Run the fused PoseMap MLP kernel.

    Args:
        z: (N, latent_dim) float32
        params: dict of weights (see init_params), stored as (in, out)
        compute_dtype: dtype of MXU operands (f32 or bf16); accumulation is f32
        tile_n: optional batch-tile size (multiple of 8)

    Returns:
        (tvec, rvec): (N, 3) and (N, 6) float32
    """
    n, latent_dim = z.shape
    breadth = params["w_in"].shape[1]
    depth = params["w_hid"].shape[0]

    bp = _round_up(breadth, 128)            # lane-dense hidden width
    if tile_n is None:
        tile_n = min(512, _round_up(max(n, 8), 8))
    n_pad = _round_up(n, tile_n)

    f32 = jnp.float32

    def pad_last(a, width):
        return jnp.pad(a, [(0, 0)] * (a.ndim - 1) + [(0, width - a.shape[-1])])

    # Zero-pad breadth everywhere (keeps math identical) and fuse the heads.
    w_in = pad_last(params["w_in"], bp).astype(compute_dtype)
    b_in = pad_last(params["b_in"], bp).astype(f32)
    w_hid = jnp.pad(params["w_hid"],
                    ((0, 0), (0, bp - breadth), (0, bp - breadth))
                    ).astype(compute_dtype)
    b_hid = pad_last(params["b_hid"], bp).astype(f32)
    w_head = jnp.pad(jnp.concatenate([params["w_t"], params["w_r"]], axis=1),
                     ((0, bp - breadth), (0, 0))).astype(compute_dtype)
    b_head = jnp.concatenate([params["b_t"], params["b_r"]], axis=1).astype(f32)
    z_p = jnp.pad(z, ((0, n_pad - n), (0, 0))).astype(compute_dtype)

    n_out = 9  # 3 (tvec) + 6 (rvec)
    grid = (n_pad // tile_n,)

    def resident(*shape):
        # Weight tiles: same block for every grid step -> stay VMEM-resident.
        return pl.BlockSpec(shape, lambda i, _s=shape: (0,) * len(_s))

    itemsize = jnp.dtype(compute_dtype).itemsize
    flops = 2 * n_pad * (latent_dim * bp + depth * bp * bp + bp * n_out)
    bytes_accessed = (z_p.size * itemsize
                      + (w_in.size + w_hid.size + w_head.size) * itemsize
                      + (b_in.size + b_hid.size + b_head.size) * 4
                      + n_pad * n_out * 4)
    cost = pl.CostEstimate(flops=flops,
                           transcendentals=3 * n_pad,
                           bytes_accessed=bytes_accessed)

    out = pl.pallas_call(
        posemap_kernel,
        out_shape=jax.ShapeDtypeStruct((n_pad, n_out), jnp.float32),
        grid=grid,
        in_specs=[
            pl.BlockSpec((tile_n, latent_dim), lambda i: (i, 0)),  # z tile
            resident(latent_dim, bp),                              # w_in
            resident(1, bp),                                       # b_in
            resident(depth, bp, bp),                               # w_hid
            resident(depth, 1, bp),                                # b_hid
            resident(bp, n_out),                                   # w_head
            resident(1, n_out),                                    # b_head
        ],
        out_specs=pl.BlockSpec((tile_n, n_out), lambda i: (i, 0)),
        compiler_params=pltpu.CompilerParams(
            # batch tiles are independent -> megacore-shardable on v7x
            dimension_semantics=("parallel",),
            # Note: raise vmem_limit_bytes here if breadth/depth are scaled up
            # and the resident weight stack + batch tile exceed the default
            # 32 MiB scoped limit (budget against 64 MiB physical on v7x).
        ),
        cost_estimate=cost,
    )(z_p, w_in, b_in, w_hid, b_hid, w_head, b_head)

    tvec = out[:n, :3]
    rvec = out[:n, 3:9]
    return tvec, rvec


def init_params(key, latent_dim, depth, breadth):
    """Deterministic synthetic parameters (weights stored as (in, out))."""
    ks = jax.random.split(key, 8)
    scale = 0.1
    return {
        "w_in": scale * jax.random.normal(ks[0], (latent_dim, breadth), jnp.float32),
        "b_in": scale * jax.random.normal(ks[1], (1, breadth), jnp.float32),
        "w_hid": scale * jax.random.normal(ks[2], (depth, breadth, breadth), jnp.float32),
        "b_hid": scale * jax.random.normal(ks[3], (depth, 1, breadth), jnp.float32),
        "w_t": scale * jax.random.normal(ks[4], (breadth, 3), jnp.float32),
        "b_t": scale * jax.random.normal(ks[5], (1, 3), jnp.float32),
        "w_r": scale * jax.random.normal(ks[6], (breadth, 6), jnp.float32),
        "b_r": scale * jax.random.normal(ks[7], (1, 6), jnp.float32),
    }


def posemap_reference(z, params):
    """Pure-JAX reference matching PoseMap.forward semantics."""
    h = jax.nn.relu(z @ params["w_in"] + params["b_in"])
    for d in range(params["w_hid"].shape[0]):
        h = jax.nn.relu(h @ params["w_hid"][d] + params["b_hid"][d])
    tvec = jax.nn.sigmoid(h @ params["w_t"] + params["b_t"])
    rvec = h @ params["w_r"] + params["b_r"]
    return tvec, rvec


if __name__ == "__main__":
    latent_dim, depth, breadth = 16, 2, 32
    batch = 8

    key = jax.random.PRNGKey(0)
    k_params, k_z = jax.random.split(key)
    params = init_params(k_params, latent_dim, depth, breadth)
    z = jax.random.normal(k_z, (batch, latent_dim), jnp.float32)

    # f32 path (exact vs reference)
    tvec, rvec = jax.block_until_ready(posemap_forward(z, params))
    tvec_ref, rvec_ref = posemap_reference(z, params)
    assert tvec.shape == (batch, 3) and rvec.shape == (batch, 6)
    assert jnp.allclose(tvec, tvec_ref, atol=1e-5, rtol=1e-5)
    assert jnp.allclose(rvec, rvec_ref, atol=1e-5, rtol=1e-5)

    # bf16 MXU-operand path (f32 accumulation) — looser tolerance
    tvec_bf, rvec_bf = jax.block_until_ready(
        posemap_forward(z, params, compute_dtype=jnp.bfloat16))
    assert jnp.allclose(tvec_bf, tvec_ref, atol=5e-2, rtol=5e-2)
    assert jnp.allclose(rvec_bf, rvec_ref, atol=5e-2, rtol=5e-2)

    print("KERNEL_OK")
</pallas_src>

<mosaic_0001>
module attributes {stable_mosaic.version = 11 : i64} {
  func.func @posemap_kernel(%arg0: i32, %arg1: memref<8x16xf32, #tpu.memory_space<vmem>>, %arg2: memref<16x128xf32, #tpu.memory_space<vmem>>, %arg3: memref<1x128xf32, #tpu.memory_space<vmem>>, %arg4: memref<2x128x128xf32, #tpu.memory_space<vmem>>, %arg5: memref<2x1x128xf32, #tpu.memory_space<vmem>>, %arg6: memref<128x9xf32, #tpu.memory_space<vmem>>, %arg7: memref<1x9xf32, #tpu.memory_space<vmem>>, %arg8: memref<8x9xf32, #tpu.memory_space<vmem>>) attributes {dimension_semantics = [#tpu.dimension_semantics<parallel>], iteration_bounds = array<i64: 1>, scalar_prefetch = 0 : i64, scratch_operands = 0 : i64, tpu.core_type = #tpu.core_type<tc>, window_params = [{transform_indices = @transform_0, window_bounds = array<i64: 8, 16>}, {pipeline_mode = #tpu.pipeline_mode<synchronous>, transform_indices = @transform_1, window_bounds = array<i64: 16, 128>}, {pipeline_mode = #tpu.pipeline_mode<synchronous>, transform_indices = @transform_2, window_bounds = array<i64: 1, 128>}, {pipeline_mode = #tpu.pipeline_mode<synchronous>, transform_indices = @transform_3, window_bounds = array<i64: 2, 128, 128>}, {pipeline_mode = #tpu.pipeline_mode<synchronous>, transform_indices = @transform_4, window_bounds = array<i64: 2, 1, 128>}, {pipeline_mode = #tpu.pipeline_mode<synchronous>, transform_indices = @transform_5, window_bounds = array<i64: 128, 9>}, {pipeline_mode = #tpu.pipeline_mode<synchronous>, transform_indices = @transform_6, window_bounds = array<i64: 1, 9>}, {transform_indices = @transform_7, window_bounds = array<i64: 8, 9>}]} {
    %c0 = arith.constant 0 : index
    %c0_0 = arith.constant 0 : index
    %0 = vector.load %arg1[%c0, %c0_0] : memref<8x16xf32, #tpu.memory_space<vmem>>, vector<8x16xf32>
    %c0_1 = arith.constant 0 : index
    %c0_2 = arith.constant 0 : index
    %1 = vector.load %arg2[%c0_1, %c0_2] : memref<16x128xf32, #tpu.memory_space<vmem>>, vector<16x128xf32>
    %cst = arith.constant dense<0.000000e+00> : vector<8x128xf32>
    %2 = tpu.matmul %0, %1, %cst {dimension_numbers = #tpu.dot_dimension_numbers<[1], [0], [0], [1], [0, 0, 1, 1], [], []>} : vector<8x16xf32>, vector<16x128xf32>, vector<8x128xf32> -> vector<8x128xf32>
    %c0_3 = arith.constant 0 : index
    %c0_4 = arith.constant 0 : index
    %3 = vector.load %arg3[%c0_3, %c0_4] : memref<1x128xf32, #tpu.memory_space<vmem>>, vector<1x128xf32>
    %4 = vector.broadcast %3 : vector<1x128xf32> to vector<8x128xf32>
    %5 = arith.addf %2, %4 : vector<8x128xf32>
    %cst_5 = arith.constant 0.000000e+00 : f32
    %6 = vector.broadcast %cst_5 : f32 to vector<8x128xf32>
    %7 = arith.maximumf %5, %6 : vector<8x128xf32>
    %c0_6 = arith.constant 0 : index
    %c0_7 = arith.constant 0 : index
    %c0_8 = arith.constant 0 : index
    %8 = vector.load %arg4[%c0_6, %c0_7, %c0_8] : memref<2x128x128xf32, #tpu.memory_space<vmem>>, vector<1x128x128xf32>
    %9 = vector.shape_cast %8 : vector<1x128x128xf32> to vector<128x128xf32>
    %cst_9 = arith.constant dense<0.000000e+00> : vector<8x128xf32>
    %10 = tpu.matmul %7, %9, %cst_9 {dimension_numbers = #tpu.dot_dimension_numbers<[1], [0], [0], [1], [0, 0, 1, 1], [], []>} : vector<8x128xf32>, vector<128x128xf32>, vector<8x128xf32> -> vector<8x128xf32>
    %c0_10 = arith.constant 0 : index
    %c0_11 = arith.constant 0 : index
    %c0_12 = arith.constant 0 : index
    %11 = vector.load %arg5[%c0_10, %c0_11, %c0_12] : memref<2x1x128xf32, #tpu.memory_space<vmem>>, vector<1x1x128xf32>
    %12 = vector.shape_cast %11 : vector<1x1x128xf32> to vector<1x128xf32>
    %13 = vector.broadcast %12 : vector<1x128xf32> to vector<8x128xf32>
    %14 = arith.addf %10, %13 : vector<8x128xf32>
    %cst_13 = arith.constant 0.000000e+00 : f32
    %15 = vector.broadcast %cst_13 : f32 to vector<8x128xf32>
    %16 = arith.maximumf %14, %15 : vector<8x128xf32>
    %c1 = arith.constant 1 : index
    %c0_14 = arith.constant 0 : index
    %c0_15 = arith.constant 0 : index
    %17 = vector.load %arg4[%c1, %c0_14, %c0_15] : memref<2x128x128xf32, #tpu.memory_space<vmem>>, vector<1x128x128xf32>
    %18 = vector.shape_cast %17 : vector<1x128x128xf32> to vector<128x128xf32>
    %cst_16 = arith.constant dense<0.000000e+00> : vector<8x128xf32>
    %19 = tpu.matmul %16, %18, %cst_16 {dimension_numbers = #tpu.dot_dimension_numbers<[1], [0], [0], [1], [0, 0, 1, 1], [], []>} : vector<8x128xf32>, vector<128x128xf32>, vector<8x128xf32> -> vector<8x128xf32>
    %c1_17 = arith.constant 1 : index
    %c0_18 = arith.constant 0 : index
    %c0_19 = arith.constant 0 : index
    %20 = vector.load %arg5[%c1_17, %c0_18, %c0_19] : memref<2x1x128xf32, #tpu.memory_space<vmem>>, vector<1x1x128xf32>
    %21 = vector.shape_cast %20 : vector<1x1x128xf32> to vector<1x128xf32>
    %22 = vector.broadcast %21 : vector<1x128xf32> to vector<8x128xf32>
    %23 = arith.addf %19, %22 : vector<8x128xf32>
    %cst_20 = arith.constant 0.000000e+00 : f32
    %24 = vector.broadcast %cst_20 : f32 to vector<8x128xf32>
    %25 = arith.maximumf %23, %24 : vector<8x128xf32>
    %c0_21 = arith.constant 0 : index
    %c0_22 = arith.constant 0 : index
    %26 = vector.load %arg6[%c0_21, %c0_22] : memref<128x9xf32, #tpu.memory_space<vmem>>, vector<128x9xf32>
    %cst_23 = arith.constant dense<0.000000e+00> : vector<8x9xf32>
    %27 = tpu.matmul %25, %26, %cst_23 {dimension_numbers = #tpu.dot_dimension_numbers<[1], [0], [0], [1], [0, 0, 1, 1], [], []>} : vector<8x128xf32>, vector<128x9xf32>, vector<8x9xf32> -> vector<8x9xf32>
    %c0_24 = arith.constant 0 : index
    %c0_25 = arith.constant 0 : index
    %28 = vector.load %arg7[%c0_24, %c0_25] : memref<1x9xf32, #tpu.memory_space<vmem>>, vector<1x9xf32>
    %29 = vector.broadcast %28 : vector<1x9xf32> to vector<8x9xf32>
    %30 = arith.addf %27, %29 : vector<8x9xf32>
    %31 = tpu.iota {dimensions = array<i32: 1>} : vector<8x9xi32>
    %cst_26 = arith.constant 0.000000e+00 : f32
    %32 = vector.broadcast %cst_26 : f32 to vector<8x9xf32>
    %33 = arith.subf %32, %30 : vector<8x9xf32>
    %34 = math.exp %33 : vector<8x9xf32>
    %cst_27 = arith.constant 1.000000e+00 : f32
    %35 = vector.broadcast %cst_27 : f32 to vector<8x9xf32>
    %36 = arith.addf %35, %34 : vector<8x9xf32>
    %37 = tpu.reciprocal %36 : vector<8x9xf32> -> vector<8x9xf32>
    %c3_i32 = arith.constant 3 : i32
    %38 = vector.broadcast %c3_i32 : i32 to vector<8x9xi32>
    %39 = arith.cmpi slt, %31, %38 : vector<8x9xi32>
    %40 = arith.select %39, %37, %30 : vector<8x9xi1>, vector<8x9xf32>
    %c0_28 = arith.constant 0 : index
    %c0_29 = arith.constant 0 : index
    %41 = vector.load %arg8[%c0_28, %c0_29] : memref<8x9xf32, #tpu.memory_space<vmem>>, vector<8x9xf32>
    tpu.vector_store %arg8[%c0_28, %c0_29], %40 {strides = array<i32>} : memref<8x9xf32, #tpu.memory_space<vmem>>, vector<8x9xf32>,
    return
  }
  func.func @transform_0(%arg0: i32) -> (i32, i32) {
    %c0_i32 = arith.constant 0 : i32
    %c0_i32_0 = arith.constant 0 : i32
    return %arg0, %c0_i32 : i32, i32
  }
  func.func @transform_1(%arg0: i32) -> (i32, i32) {
    %c0_i32 = arith.constant 0 : i32
    %c0_i32_0 = arith.constant 0 : i32
    %c0_i32_1 = arith.constant 0 : i32
    return %c0_i32, %c0_i32_0 : i32, i32
  }
  func.func @transform_2(%arg0: i32) -> (i32, i32) {
    %c0_i32 = arith.constant 0 : i32
    %c0_i32_0 = arith.constant 0 : i32
    %c0_i32_1 = arith.constant 0 : i32
    return %c0_i32, %c0_i32_0 : i32, i32
  }
  func.func @transform_3(%arg0: i32) -> (i32, i32, i32) {
    %c0_i32 = arith.constant 0 : i32
    %c0_i32_0 = arith.constant 0 : i32
    %c0_i32_1 = arith.constant 0 : i32
    %c0_i32_2 = arith.constant 0 : i32
    return %c0_i32, %c0_i32_0, %c0_i32_1 : i32, i32, i32
  }
  func.func @transform_4(%arg0: i32) -> (i32, i32, i32) {
    %c0_i32 = arith.constant 0 : i32
    %c0_i32_0 = arith.constant 0 : i32
    %c0_i32_1 = arith.constant 0 : i32
    %c0_i32_2 = arith.constant 0 : i32
    return %c0_i32, %c0_i32_0, %c0_i32_1 : i32, i32, i32
  }
  func.func @transform_5(%arg0: i32) -> (i32, i32) {
    %c0_i32 = arith.constant 0 : i32
    %c0_i32_0 = arith.constant 0 : i32
    %c0_i32_1 = arith.constant 0 : i32
    return %c0_i32, %c0_i32_0 : i32, i32
  }
  func.func @transform_6(%arg0: i32) -> (i32, i32) {
    %c0_i32 = arith.constant 0 : i32
    %c0_i32_0 = arith.constant 0 : i32
    %c0_i32_1 = arith.constant 0 : i32
    return %c0_i32, %c0_i32_0 : i32, i32
  }
  func.func @transform_7(%arg0: i32) -> (i32, i32) {
    %c0_i32 = arith.constant 0 : i32
    %c0_i32_0 = arith.constant 0 : i32
    return %arg0, %c0_i32 : i32, i32
  }
}

</mosaic_0001>

<bundles_post_ra>
// kernel: tpu_custom_call.1
= control target key start
LH: loop header
LB: loop body
LE: loop exit
PB: predicated region body
PF: predicated region fallthrough
CT: control target
= control target key end

     0   :  { %12 = vsyncpa [#allocation3], 0  ;;  %s840_s0 = inlined_call_operand.vmem [shape: f32[8,16], index: 0, kind: input, shape index: {}]   ;;  %s841_s1 = inlined_call_operand.vmem [shape: f32[16,128], index: 1, kind: input, shape index: {}]   ;;  %s842_s2 = inlined_call_operand.vmem [shape: f32[1,128], index: 2, kind: input, shape index: {}]   ;;  %s843_s3 = inlined_call_operand.hbm [shape: f32[2,128,128], index: 3, kind: input, shape index: {}]   ;;  %s844_s4 = inlined_call_operand.vmem [shape: f32[2,1,128], index: 4, kind: input, shape index: {}]   ;;  %s845_s5 = inlined_call_operand.vmem [shape: f32[128,9], index: 5, kind: input, shape index: {}]   ;;  %s846_s6 = inlined_call_operand.vmem [shape: f32[1,9], index: 6, kind: input, shape index: {}]   ;;  %s847_s7 = inlined_call_operand.hbm [shape: f32[8,9], index: 7, kind: output, shape index: {}]  }
   0x1   :  { %13 = vsyncpa [#allocation4], 0  ;;  %s661_s24 = smov [#allocation2]  }
   0x2   :  { %s25_s25 = sshll.u32 %s661_s24, 4  ;;  %s26_s25 = int_to_ptr.vmem [resolvable:$true] %s25_s25 }
   0x3   :  { %s625_s26 = scalar_lea.vmem %s26_s25, 4096  ;;  %p630_p1 = scmp.lt.s32.totalorder %s26_s25, %s26_s25 }
   0x4   :  { %p626_p0 = scmp.ne.s32.totalorder %s26_s25, %s625_s26  ;;  %p631_p2 = scmp.lt.s32.totalorder %s625_s26, %s625_s26 }
   0x6   :  { %p632_p3 = por %p631_p2, %p630_p1 }
   0x8   :  { %p633_p4 = pnand %p632_p3, %p626_p0 }
   0xa   :  { %636 = shalt.err (!%p633_p4)
}
   0xb   :  { %s662_s27 = smov 128   ;;  %s663_s28 = smov 8  }
   0xc   :  { %31 = dma.hbm_to_vmem [thread:$0]  %s843_s3, 4096, %s26_s25, [#allocation3], %s662_s27, %s662_s27, %s663_s28  }
   0xd   :  { %657 = dma.done.wait [#allocation3], 4096  }
   0xe   :  { %658 = vsyncadd [#allocation3], 4294963200  ;;  %v664_v0 = vmov 0.0   ;;  %vm665_vm0 = vmmov 0   ;;  %v43_v1 = vld [vmem:[%s841_s1 + $0x8] sm:$0xff]  ;;  %v42_v2 = vld [vmem:[%s841_s1] sm:$0xff] }
   0xf   :  { %495 = vmatprep.subr.mxu0 %v664_v0  ;;  %499 = vmatprep.mubr.msk.f32.mxu0 %vm665_vm0, %v664_v0  ;;  %v41_v3 = vld [vmem:[%s840_s0] sm:$0xff]  ;;  %vm51_vm1 = vcmask 130048   ;;  %v141_v4 = vld [vmem:[#allocation2 + $0x78] sm:$0xff]  ;;  %v140_v5 = vld [vmem:[#allocation2 + $0x70] sm:$0xff]  ;;  %vm418_vm3 = vcmask 72704  }
  0x10   :  { %502 = vmatprep.subr.mxu1 %v664_v0  ;;  %534 = vmatprep.mubr.msk.f32.mxu1 %vm665_vm0, %v664_v0  ;;  %v139_v6 = vld [vmem:[#allocation2 + $0x68] sm:$0xff]  ;;  %v138_v7 = vld [vmem:[#allocation2 + $0x60] sm:$0xff]  ;;  %v137_v8 = vld [vmem:[#allocation2 + $0x58] sm:$0xff] }
  0x11   :  { %496 = vmatpush3.msra.mxu0 %v43_v1  ;;  %503 = vmatpush3.msra.mxu1 %v141_v4  ;;  %v136_v9 = vld [vmem:[#allocation2 + $0x50] sm:$0xff]  ;;  %v135_v10 = vld [vmem:[#allocation2 + $0x48] sm:$0xff]  ;;  %v134_v11 = vld [vmem:[#allocation2 + $0x40] sm:$0xff] }
  0x12   :  { %497 = vmatprep.subr.mxu0 %v664_v0  ;;  %504 = vmatprep.subr.mxu1 %v664_v0  ;;  %v133_v12 = vld [vmem:[#allocation2 + $0x38] sm:$0xff]  ;;  %v132_v13 = vld [vmem:[#allocation2 + $0x30] sm:$0xff]  ;;  %v131_v14 = vld [vmem:[#allocation2 + $0x28] sm:$0xff] }
  0x13   :  { %498 = vmatpush3.msra.mxu0 %v42_v2  ;;  %505 = vmatpush3.msra.mxu1 %v140_v5  ;;  %v130_v15 = vld [vmem:[#allocation2 + $0x20] sm:$0xff]  ;;  %v129_v16 = vld [vmem:[#allocation2 + $0x18] sm:$0xff]  ;;  %v128_v17 = vld [vmem:[#allocation2 + $0x10] sm:$0xff] }
  0x14   :  { %500 = vmatmul.mubr.msk.f32.vlgmr.msra.gmra.mxu0 %vm51_vm1, %v41_v3  ;;  %506 = vmatprep.subr.mxu1 %v664_v0  ;;  %v127_v18 = vld [vmem:[#allocation2 + $0x8] sm:$0xff]  ;;  %v126_v19 = vld [vmem:[#allocation2] sm:$0xff]  ;;  %v236_v20 = vld [vmem:[#allocation2 + $0xf8] sm:$0xff] }
  0x15   :  { %537 = vmatprep.subr.mxu0 %v664_v0  ;;  %507 = vmatpush3.msra.mxu1 %v139_v6  ;;  %v235_v21 = vld [vmem:[#allocation2 + $0xf0] sm:$0xff]  ;;  %v234_v22 = vld [vmem:[#allocation2 + $0xe8] sm:$0xff]  ;;  %v233_v23 = vld [vmem:[#allocation2 + $0xe0] sm:$0xff] }
  0x16   :  { %569 = vmatprep.mubr.msk.f32.mxu0 %vm665_vm0, %v664_v0  ;;  %508 = vmatprep.subr.mxu1 %v664_v0  ;;  %v232_v24 = vld [vmem:[#allocation2 + $0xd8] sm:$0xff]  ;;  %v231_v25 = vld [vmem:[#allocation2 + $0xd0] sm:$0xff]  ;;  %v230_v26 = vld [vmem:[#allocation2 + $0xc8] sm:$0xff] }
  0x17   :  { %509 = vmatpush3.msra.mxu1 %v138_v7  ;;  %538 = vmatpush3.msra.mxu0 %v236_v20  ;;  %v229_v27 = vld [vmem:[#allocation2 + $0xc0] sm:$0xff]  ;;  %v228_v28 = vld [vmem:[#allocation2 + $0xb8] sm:$0xff]  ;;  %v227_v29 = vld [vmem:[#allocation2 + $0xb0] sm:$0xff] }
  0x18   :  { %510 = vmatprep.subr.mxu1 %v664_v0  ;;  %539 = vmatprep.subr.mxu0 %v664_v0  ;;  %v226_v30 = vld [vmem:[#allocation2 + $0xa8] sm:$0xff]  ;;  %v225_v31 = vld [vmem:[#allocation2 + $0xa0] sm:$0xff]  ;;  %v224_v32 = vld [vmem:[#allocation2 + $0x98] sm:$0xff] }
  0x19   :  { %511 = vmatpush3.msra.mxu1 %v137_v8  ;;  %540 = vmatpush3.msra.mxu0 %v235_v21  ;;  %v435_v33 = vld [vmem:[%s842_s2] ss:$0 sm:$0xff]  ;;  %v223_v38 = vld [vmem:[#allocation2 + $0x90] sm:$0xff]  ;;  %v222_v39 = vld [vmem:[#allocation2 + $0x88] sm:$0xff] }
  0x1a   :  { %512 = vmatprep.subr.mxu1 %v664_v0  ;;  %541 = vmatprep.subr.mxu0 %v664_v0  ;;  %v221_v40 = vld [vmem:[#allocation2 + $0x80] sm:$0xff]  ;;  %v331_v41 = vld [vmem:[%s845_s5 + $0x78] sm:$0xff]  ;;  %v330_v42 = vld [vmem:[%s845_s5 + $0x70] sm:$0xff] }
  0x1b   :  { %513 = vmatpush3.msra.mxu1 %v136_v9  ;;  %542 = vmatpush3.msra.mxu0 %v234_v22  ;;  %v329_v43 = vld [vmem:[%s845_s5 + $0x68] sm:$0xff]  ;;  %v328_v44 = vld [vmem:[%s845_s5 + $0x60] sm:$0xff]  ;;  %v327_v45 = vld [vmem:[%s845_s5 + $0x58] sm:$0xff] }
  0x1c   :  { %514 = vmatprep.subr.mxu1 %v664_v0  ;;  %543 = vmatprep.subr.mxu0 %v664_v0  ;;  %v326_v46 = vld [vmem:[%s845_s5 + $0x50] sm:$0xff]  ;;  %v325_v47 = vld [vmem:[%s845_s5 + $0x48] sm:$0xff]  ;;  %v324_v48 = vld [vmem:[%s845_s5 + $0x40] sm:$0xff] }
  0x1d   :  { %515 = vmatpush3.msra.mxu1 %v135_v10  ;;  %544 = vmatpush3.msra.mxu0 %v233_v23  ;;  %v323_v49 = vld [vmem:[%s845_s5 + $0x38] sm:$0xff]  ;;  %v322_v50 = vld [vmem:[%s845_s5 + $0x30] sm:$0xff]  ;;  %v321_v51 = vld [vmem:[%s845_s5 + $0x28] sm:$0xff] }
  0x1e   :  { %516 = vmatprep.subr.mxu1 %v664_v0  ;;  %545 = vmatprep.subr.mxu0 %v664_v0  ;;  %v320_v52 = vld [vmem:[%s845_s5 + $0x20] sm:$0xff]  ;;  %v319_v53 = vld [vmem:[%s845_s5 + $0x18] sm:$0xff]  ;;  %v318_v59 = vld [vmem:[%s845_s5 + $0x10] sm:$0xff] }
  0x1f   :  { %517 = vmatpush3.msra.mxu1 %v134_v11  ;;  %546 = vmatpush3.msra.mxu0 %v232_v24  ;;  %v437_v54 = vld [vmem:[%s844_s4] ss:$0 sm:$0xff]  ;;  %v317_v60 = vld [vmem:[%s845_s5 + $0x8] sm:$0xff]  ;;  %v439_v62 = vld [vmem:[%s844_s4 + $0x1] ss:$0 sm:$0xff]  ;;  %v409_v11 = vlaneseq  ;;  %s666_s4 = smov [#allocation5]  }
  0x20   :  { %518 = vmatprep.subr.mxu1 %v664_v0  ;;  %547 = vmatprep.subr.mxu0 %v664_v0  ;;  %v316_v61 = vld [vmem:[%s845_s5] sm:$0xff]  ;;  %s426_s5 = sshll.u32 %s666_s4, 4  ;;  %s427_s5 = int_to_ptr.vmem [resolvable:$true] %s426_s5 }
  0x21   :  { %519 = vmatpush3.msra.mxu1 %v133_v12  ;;  %548 = vmatpush3.msra.mxu0 %v231_v25  ;;  %v440_v4 = vld [vmem:[%s846_s6] ss:$0 sm:$0xff]  ;;  %v410_v12 = vand.u32 127, %v409_v11  ;;  %s637_s6 = scalar_lea.vmem %s427_s5, 128  ;;  %p642_p6 = scmp.lt.s32.totalorder %s427_s5, %s427_s5 }
  0x22   :  { %520 = vmatprep.subr.mxu1 %v664_v0  ;;  %549 = vmatprep.subr.mxu0 %v664_v0  ;;  %p638_p5 = scmp.ne.s32.totalorder %s427_s5, %s637_s6  ;;  %p643_p7 = scmp.lt.s32.totalorder %s637_s6, %s637_s6 }
  0x23   :  { %521 = vmatpush3.msra.mxu1 %v132_v13  ;;  %550 = vmatpush3.msra.mxu0 %v230_v26  ;;  %vm416_vm2 = vcmp.lt.s32.totalorder %v410_v12, 3 }
  0x24   :  { %522 = vmatprep.subr.mxu1 %v664_v0  ;;  %551 = vmatprep.subr.mxu0 %v664_v0  ;;  %p644_p8 = por %p643_p7, %p642_p6 }
  0x25   :  { %523 = vmatpush3.msra.mxu1 %v131_v14  ;;  %552 = vmatpush3.msra.mxu0 %v229_v27 }
  0x26   :  { %524 = vmatprep.subr.mxu1 %v664_v0  ;;  %553 = vmatprep.subr.mxu0 %v664_v0  ;;  %p645_p9 = pnand %p644_p8, %p638_p5 }
  0x27   :  { %525 = vmatpush3.msra.mxu1 %v130_v15  ;;  %554 = vmatpush3.msra.mxu0 %v228_v28 }
  0x28   :  { %526 = vmatprep.subr.mxu1 %v664_v0  ;;  %555 = vmatprep.subr.mxu0 %v664_v0 }
  0x29   :  { %527 = vmatpush3.msra.mxu1 %v129_v16  ;;  %556 = vmatpush3.msra.mxu0 %v227_v29 }
  0x2a   :  { %528 = vmatprep.subr.mxu1 %v664_v0  ;;  %557 = vmatprep.subr.mxu0 %v664_v0 }
  0x2b   :  { %529 = vmatpush3.msra.mxu1 %v128_v17  ;;  %558 = vmatpush3.msra.mxu0 %v226_v30 }
  0x2c   :  { %530 = vmatprep.subr.mxu1 %v664_v0  ;;  %559 = vmatprep.subr.mxu0 %v664_v0 }
  0x2d   :  { %531 = vmatpush3.msra.mxu1 %v127_v18  ;;  %560 = vmatpush3.msra.mxu0 %v225_v31 }
  0x2e   :  { %532 = vmatprep.subr.mxu1 %v664_v0  ;;  %561 = vmatprep.subr.mxu0 %v664_v0 }
  0x2f   :  { %533 = vmatpush3.msra.mxu1 %v126_v19  ;;  %562 = vmatpush3.msra.mxu0 %v224_v32 }
  0x30   :  { %572 = vmatprep.subr.mxu1 %v664_v0  ;;  %563 = vmatprep.subr.mxu0 %v664_v0 }
  0x31   :  { %564 = vmatpush3.msra.mxu0 %v223_v38 }
  0x32   :  { %565 = vmatprep.subr.mxu0 %v664_v0 }
  0x33   :  { %566 = vmatpush3.msra.mxu0 %v222_v39 }
  0x34   :  { %567 = vmatprep.subr.mxu0 %v664_v0 }
  0x35   :  { %568 = vmatpush3.msra.mxu0 %v221_v40 }
  0xd4   :  { %v121_v34 = vpop.f32.mrf.mxu0 }
  0xd5   :  { %v122_v35 = vadd.f32 %v435_v33, %v121_v34 }
  0xd6   :  { %v501_v36 = vpop.f32.mrf.mxu0 }
  0xd7   :  { %v125_v37 = vmax.f32 %v122_v35, 0.0 }
  0xd9   :  { %535 = vmatmul.mubr.f32.vlgmr.msra.gmra.mxu1 %v125_v37 }
  0xda   :  { %604 = vmatprep.mubr.msk.f32.mxu1 %vm665_vm0, %v664_v0  ;;  %573 = vmatpush3.msra.mxu1 %v331_v41 }
  0xdb   :  { %574 = vmatprep.subr.mxu1 %v664_v0 }
  0xdc   :  { %575 = vmatpush3.msra.mxu1 %v330_v42 }
  0xdd   :  { %576 = vmatprep.subr.mxu1 %v664_v0 }
  0xde   :  { %577 = vmatpush3.msra.mxu1 %v329_v43 }
  0xdf   :  { %578 = vmatprep.subr.mxu1 %v664_v0 }
  0xe0   :  { %579 = vmatpush3.msra.mxu1 %v328_v44 }
  0xe1   :  { %580 = vmatprep.subr.mxu1 %v664_v0 }
  0xe2   :  { %581 = vmatpush3.msra.mxu1 %v327_v45 }
  0xe3   :  { %582 = vmatprep.subr.mxu1 %v664_v0 }
  0xe4   :  { %583 = vmatpush3.msra.mxu1 %v326_v46 }
  0xe5   :  { %584 = vmatprep.subr.mxu1 %v664_v0 }
  0xe6   :  { %585 = vmatpush3.msra.mxu1 %v325_v47 }
  0xe7   :  { %586 = vmatprep.subr.mxu1 %v664_v0 }
  0xe8   :  { %587 = vmatpush3.msra.mxu1 %v324_v48 }
  0xe9   :  { %588 = vmatprep.subr.mxu1 %v664_v0 }
  0xea   :  { %589 = vmatpush3.msra.mxu1 %v323_v49 }
  0xeb   :  { %590 = vmatprep.subr.mxu1 %v664_v0 }
  0xec   :  { %591 = vmatpush3.msra.mxu1 %v322_v50 }
  0xed   :  { %592 = vmatprep.subr.mxu1 %v664_v0 }
  0xee   :  { %593 = vmatpush3.msra.mxu1 %v321_v51 }
  0xef   :  { %594 = vmatprep.subr.mxu1 %v664_v0 }
  0xf0   :  { %595 = vmatpush3.msra.mxu1 %v320_v52 }
  0xf1   :  { %596 = vmatprep.subr.mxu1 %v664_v0 }
  0xf2   :  { %597 = vmatpush3.msra.mxu1 %v319_v53 }
  0xf3   :  { %598 = vmatprep.subr.mxu1 %v664_v0 }
  0xf4   :  { %599 = vmatpush3.msra.mxu1 %v318_v59 }
  0xf5   :  { %600 = vmatprep.subr.mxu1 %v664_v0 }
  0xf6   :  { %601 = vmatpush3.msra.mxu1 %v317_v60 }
  0xf7   :  { %602 = vmatprep.subr.mxu1 %v664_v0 }
  0xf8   :  { %603 = vmatpush3.msra.mxu1 %v316_v61 }
 0x199   :  { %v215_v55 = vpop.f32.mrf.mxu1 }
 0x19a   :  { %v216_v56 = vadd.f32 %v437_v54, %v215_v55 }
 0x19b   :  { %v536_v57 = vpop.f32.mrf.mxu1 }
 0x19c   :  { %v219_v58 = vmax.f32 %v216_v56, 0.0 }
 0x19e   :  { %570 = vmatmul.mubr.f32.vlgmr.msra.gmra.mxu0 %v219_v58 }
 0x25e   :  { %v311_v63 = vpop.f32.mrf.mxu0 }
 0x25f   :  { %v312_v1 = vadd.f32 %v439_v62, %v311_v63 }
 0x260   :  { %v571_v2 = vpop.f32.mrf.mxu0 }
 0x261   :  { %v315_v3 = vmax.f32 %v312_v1, 0.0 }
 0x263   :  { %605 = vmatmul.mubr.f32.vlgmr.msra.gmra.mxu1 %v315_v3 }
 0x323   :  { %v405_v5 = vpop.f32.mrf.mxu1 }
 0x324   :  { %v406_v0 = vadd.f32 %v440_v4, %v405_v5 }
 0x325   :  { %v606_v6 = vpop.f32.mrf.mxu1 }
 0x326   :  { %v411_v7 = vsub.f32 0.0, %v406_v0 }
 0x328   :  { %v412_v8 = vmul.f32 1.442695, %v411_v7 }
 0x32a   :  { %613 = vpow2.f32 %v412_v8 }
 0x337   :  { %v614_v9 = vpop.eup %613 }
 0x338   :  { %v414_v10 = vadd.f32 1.0, %v614_v9 }
 0x33a   :  { %615 = vrcp.f32 %v414_v10 }
 0x347   :  { %v616_v13 = vpop.eup %615 }
 0x348   :  { %v417_v14 = vsel %vm416_vm2, %v616_v13, %v406_v0 }
 0x349   :  { %419 = vst.msk [vmem:[#allocation5] sm:$0xff] %vm418_vm3, %v417_v14 }
 0x34a   :  { %648 = shalt.err (!%p645_p9)
}
 0x34b   :  { %429 = dma.vmem_to_hbm [thread:$0]  %s427_s5, 128, %s847_s7, [#allocation4]  }
 0x34c   :  { %659 = dma.done.wait [#allocation4], 128  }
 0x34d   :  { %660 = vsyncadd [#allocation4], 4294967168 }
 0x34e   :  { %433 = vsyncpa [#allocation3], 1 }
 0x34f   :  { %434 = vsyncpa [#allocation4], 1 }

</bundles_post_ra>
